<compile_context>
chip_gen: v5e
topology: v5e:2x2
jax: 0.10.0
libtpu: 0.0.40
codegen_flags: <defaults>
</compile_context>

<pallas_src>
import functools

import jax
import jax.numpy as jnp
from jax.experimental import pallas as pl
from jax.experimental.pallas import tpu as pltpu


def _round_up(x, m):
    return (x + m - 1) // m * m


def _pick_tile_rows(hw, target=128):
    """Largest divisor of hw that is a multiple of 8 and <= target (else hw)."""
    best = None
    for t in range(8, min(hw, max(target, 8)) + 1, 8):
        if hw % t == 0:
            best = t
    return best if best is not None else hw


# --------------------------------------------------------------------------
# Pass 1: branch convs (single dense-K im2col matmul each) + pooled partials.
# --------------------------------------------------------------------------
def _branch_conv_kernel(p1_ref, p2_ref, w1_ref, w2_ref, b1_ref, b2_ref,
                        o1_ref, o2_ref, pool_ref):
    # p*_ref  : (1, TQ, Kpad) bf16  pre-im2col'd patches (lane-dense K)
    # w*_ref  : (Kpad, Cpad)  bf16  conv weights, BN scale folded in
    # b*_ref  : (1, Cpad)     f32   BN shift
    # o*_ref  : (1, TQ, Cpad) bf16  branch outputs (post folded-BN + ReLU)
    # pool_ref: (1, 1, 1, Cpad) f32 per-tile pooled sum of U = o1 + o2
    def branch(p_ref, w_ref, b_ref, o_ref):
        acc = jnp.dot(p_ref[0], w_ref[...],
                      preferred_element_type=jnp.float32)     # (TQ, Cpad) f32
        o = jnp.maximum(acc + b_ref[...], 0.0)                # shift + ReLU
        o_ref[0] = o.astype(o_ref.dtype)                      # bf16 store
        return jnp.sum(o, axis=0, keepdims=True)              # (1, Cpad) f32

    s1 = branch(p1_ref, w1_ref, b1_ref, o1_ref)
    s2 = branch(p2_ref, w2_ref, b2_ref, o2_ref)
    pool_ref[...] = (s1 + s2).reshape(pool_ref.shape)


# --------------------------------------------------------------------------
# Pass 2: global-pool attention (fc1 -> fc2 -> softmax) + weighted sum.
# --------------------------------------------------------------------------
def _attend_kernel(pool_ref, fc1w_ref, fc1b_ref, fc2w_ref, o1_ref, o2_ref,
                   v_ref, *, inv_hw):
    # pool_ref: (1, T, 1, Cpad) f32  per-tile pooled partial sums (this batch)
    # fc1w    : (Cpad, d) f32 (BN scale folded);  fc1b : (1, d) f32
    # fc2w    : (d, 2*Cpad) f32 (branch0 cols [0,Cpad), branch1 [Cpad,2Cpad))
    # o*_ref  : (1, TQ, Cpad) bf16 branch outputs;  v_ref : (1, TQ, Cpad) f32
    Cpad = v_ref.shape[-1]
    # Attention weights are a tiny (1,Cpad) computation -> recompute per tile so
    # both grid axes stay "parallel" (no cross-tile scratch dependency).
    s = jnp.sum(pool_ref[...].reshape(-1, Cpad), axis=0, keepdims=True) * inv_hw
    z = jnp.maximum(
        jnp.dot(s, fc1w_ref[...], preferred_element_type=jnp.float32)
        + fc1b_ref[...], 0.0)                                  # (1, d)
    ab = jnp.dot(z, fc2w_ref[...],
                 preferred_element_type=jnp.float32)           # (1, 2*Cpad)
    # softmax over the M=2 branch axis via static 128-aligned slices
    l0 = ab[:, :Cpad]
    l1 = ab[:, Cpad:]
    m = jnp.maximum(l0, l1)
    e0 = jnp.exp(l0 - m)
    e1 = jnp.exp(l1 - m)
    inv = 1.0 / (e0 + e1)
    a0 = e0 * inv
    a1 = e1 * inv
    V = (o1_ref[0].astype(jnp.float32) * a0
         + o2_ref[0].astype(jnp.float32) * a1)                 # (TQ, Cpad)
    v_ref[0] = V


def _vmem_limit(per_step_bytes):
    # Per-generation cap (never the full physical VMEM): 75% of what the
    # device reports (v7x ~48 MiB, v5e/v6e ~96 MiB); floor at the 32 MiB
    # default scoped limit; never request more than the blocks need + headroom.
    try:
        phys = int(pltpu.get_tpu_info().vmem_capacity_bytes)
    except Exception:
        phys = 64 * 1024 * 1024          # conservative v7x-sized fallback
    cap = (phys * 3) // 4
    need = int(per_step_bytes) + (8 << 20)
    return int(max(min(need, cap), 32 << 20))


def skconv_forward(x_nchw, params, *, tile_rows_target=128):
    w1 = params["w1"]
    w2 = params["w2"]
    Cin, Cout = w1.shape[2], w1.shape[3]
    d = params["fc1_w"].shape[1]
    Cpad = _round_up(Cout, 128)          # lane-dense channel dim
    K = 9 * Cin
    Kpad = _round_up(K, 128)             # lane-dense contraction dim

    # ---- fold BN scale into weights, pad (K,Cout) -> (Kpad,Cpad), bf16 MXU in
    def prep_conv(w, scale):
        w = (w * scale[0]).reshape(K, Cout)
        w = jnp.pad(w, ((0, Kpad - K), (0, Cpad - Cout)))
        return w.astype(jnp.bfloat16)

    w1p = prep_conv(w1, params["s1"])
    w2p = prep_conv(w2, params["s2"])
    b1p = jnp.pad(params["b1"], ((0, 0), (0, Cpad - Cout))).astype(jnp.float32)
    b2p = jnp.pad(params["b2"], ((0, 0), (0, Cpad - Cout))).astype(jnp.float32)
    fc1w = jnp.pad(params["fc1_w"] * params["fc1_s"],
                   ((0, Cpad - Cout), (0, 0))).astype(jnp.float32)
    fc1b = params["fc1_b"].astype(jnp.float32)
    fc2w_raw = params["fc2_w"]
    # Padded channels stay exactly zero end-to-end (zero conv cols/bias, zero
    # fc1 rows, zero fc2 cols -> softmax(0,0)=0.5 multiplies zero o1/o2).
    fc2w = jnp.concatenate(
        [jnp.pad(fc2w_raw[:, :Cout], ((0, 0), (0, Cpad - Cout))),
         jnp.pad(fc2w_raw[:, Cout:], ((0, 0), (0, Cpad - Cout)))],
        axis=1).astype(jnp.float32)

    # ---- wrapper-side im2col (small Cin): lane-dense (B, HW, Kpad) bf16 LHS
    x = jnp.transpose(x_nchw, (0, 2, 3, 1)).astype(jnp.bfloat16)
    B, H, W, _ = x.shape
    HW = H * W

    def im2col(dil):
        xp = jnp.pad(x, ((0, 0), (dil, dil), (dil, dil), (0, 0)))
        taps = [xp[:, kh * dil:kh * dil + H, kw * dil:kw * dil + W, :]
                for kh in range(3) for kw in range(3)]
        p = jnp.concatenate(taps, axis=-1).reshape(B, HW, K)
        return jnp.pad(p, ((0, 0), (0, 0), (0, Kpad - K)))

    p1 = im2col(1)
    p2 = im2col(2)

    TQ = _pick_tile_rows(HW, tile_rows_target)   # spatial tile (rows of HW)
    T = HW // TQ

    def _dbl(nbytes):                            # default double-buffered block
        return 2 * nbytes

    # ---------------- pass 1: branch convs + per-tile pooled partial sums
    step1 = (2 * _dbl(TQ * Kpad * 2) + 2 * _dbl(Kpad * Cpad * 2)
             + 2 * _dbl(Cpad * 4) + 2 * _dbl(TQ * Cpad * 2) + _dbl(Cpad * 4))
    conv_flops = 2 * 2 * B * HW * Kpad * Cpad + 4 * B * HW * Cpad
    p1_bytes = (2 * B * HW * Kpad * 2 + 2 * Kpad * Cpad * 2 + 2 * Cpad * 4
                + 2 * B * HW * Cpad * 2 + B * T * Cpad * 4)

    o1, o2, pooled = pl.pallas_call(
        _branch_conv_kernel,
        out_shape=(
            jax.ShapeDtypeStruct((B, HW, Cpad), jnp.bfloat16),
            jax.ShapeDtypeStruct((B, HW, Cpad), jnp.bfloat16),
            jax.ShapeDtypeStruct((B, T, 1, Cpad), jnp.float32),
        ),
        grid=(B, T),
        in_specs=[
            pl.BlockSpec((1, TQ, Kpad), lambda b, t: (b, t, 0)),
            pl.BlockSpec((1, TQ, Kpad), lambda b, t: (b, t, 0)),
            pl.BlockSpec((Kpad, Cpad), lambda b, t: (0, 0)),
            pl.BlockSpec((Kpad, Cpad), lambda b, t: (0, 0)),
            pl.BlockSpec((1, Cpad), lambda b, t: (0, 0)),
            pl.BlockSpec((1, Cpad), lambda b, t: (0, 0)),
        ],
        out_specs=(
            pl.BlockSpec((1, TQ, Cpad), lambda b, t: (b, t, 0)),
            pl.BlockSpec((1, TQ, Cpad), lambda b, t: (b, t, 0)),
            pl.BlockSpec((1, 1, 1, Cpad), lambda b, t: (b, t, 0, 0)),
        ),
        compiler_params=pltpu.CompilerParams(
            dimension_semantics=("parallel", "parallel"),
            vmem_limit_bytes=_vmem_limit(step1)),
        cost_estimate=pl.CostEstimate(flops=conv_flops, transcendentals=0,
                                      bytes_accessed=p1_bytes),
    )(p1, p2, w1p, w2p, b1p, b2p)

    # ---------------- pass 2: attention weights + per-tile weighted sum
    step2 = (_dbl(T * Cpad * 4) + _dbl(Cpad * d * 4) + _dbl(d * 4)
             + _dbl(d * 2 * Cpad * 4) + 2 * _dbl(TQ * Cpad * 2)
             + _dbl(TQ * Cpad * 4))
    attn_flops = (B * T * (2 * Cpad * d + 2 * d * 2 * Cpad + 8 * Cpad)
                  + 6 * B * HW * Cpad)
    p2_bytes = (B * T * Cpad * 4 + (Cpad * d + d + d * 2 * Cpad) * 4
                + 2 * B * HW * Cpad * 2 + B * HW * Cpad * 4)

    out = pl.pallas_call(
        functools.partial(_attend_kernel, inv_hw=1.0 / HW),
        out_shape=jax.ShapeDtypeStruct((B, HW, Cpad), jnp.float32),
        grid=(B, T),
        in_specs=[
            pl.BlockSpec((1, T, 1, Cpad), lambda b, t: (b, 0, 0, 0)),
            pl.BlockSpec((Cpad, d), lambda b, t: (0, 0)),
            pl.BlockSpec((1, d), lambda b, t: (0, 0)),
            pl.BlockSpec((d, 2 * Cpad), lambda b, t: (0, 0)),
            pl.BlockSpec((1, TQ, Cpad), lambda b, t: (b, t, 0)),
            pl.BlockSpec((1, TQ, Cpad), lambda b, t: (b, t, 0)),
        ],
        out_specs=pl.BlockSpec((1, TQ, Cpad), lambda b, t: (b, t, 0)),
        compiler_params=pltpu.CompilerParams(
            dimension_semantics=("parallel", "parallel"),
            vmem_limit_bytes=_vmem_limit(step2)),
        cost_estimate=pl.CostEstimate(flops=attn_flops,
                                      transcendentals=2 * B * T * Cpad,
                                      bytes_accessed=p2_bytes),
    )(pooled, fc1w, fc1b, fc2w, o1, o2)

    out = out[:, :, :Cout].reshape(B, H, W, Cout)   # drop channel padding
    return jnp.transpose(out, (0, 3, 1, 2))         # back to NCHW


def fold_bn(gamma, beta, mean, var, eps=1e-5):
    scale = gamma / jnp.sqrt(var + eps)
    shift = beta - mean * scale
    return scale[None, :], shift[None, :]


def init_params(key, in_channels, out_channels, M=2, r=16, L=32):
    d = max(in_channels // r, L)
    ks = jax.random.split(key, 12)

    def bn(kg, kb, n):
        gamma = jax.random.uniform(kg, (n,), jnp.float32, 0.5, 1.5)
        beta = 0.1 * jax.random.normal(kb, (n,), jnp.float32)
        mean = 0.1 * jax.random.normal(jax.random.fold_in(kg, 7), (n,), jnp.float32)
        var = jax.random.uniform(jax.random.fold_in(kb, 7), (n,), jnp.float32, 0.5, 1.5)
        return fold_bn(gamma, beta, mean, var)

    w1 = 0.3 * jax.random.normal(ks[0], (3, 3, in_channels, out_channels), jnp.float32)
    w2 = 0.3 * jax.random.normal(ks[1], (3, 3, in_channels, out_channels), jnp.float32)
    s1, b1 = bn(ks[2], ks[3], out_channels)
    s2, b2 = bn(ks[4], ks[5], out_channels)
    fc1_w = 0.3 * jax.random.normal(ks[6], (out_channels, d), jnp.float32)
    fc1_s, fc1_b = bn(ks[7], ks[8], d)
    fc2_w = 0.3 * jax.random.normal(ks[9], (d, M * out_channels), jnp.float32)
    return dict(w1=w1, w2=w2, s1=s1, b1=b1, s2=s2, b2=b2,
                fc1_w=fc1_w, fc1_s=fc1_s, fc1_b=fc1_b, fc2_w=fc2_w)


def skconv_reference(x_nchw, params):
    # Pure-JAX reference mirroring the PyTorch forward (eval-mode BN) AND the
    # kernel's quantization points: bf16 conv inputs/weights (f32 accumulation)
    # and bf16 storage of the branch outputs before the weighted sum; the
    # pooled statistics / attention math stay f32, as in the kernel.
    x = jnp.transpose(x_nchw, (0, 2, 3, 1)).astype(jnp.bfloat16)
    B, H, W, Cin = x.shape
    Cout = params["w1"].shape[-1]

    def conv_branch(w, scale, shift, dil):
        w_eff = (w * scale[0]).astype(jnp.bfloat16)  # same BN-scale fold as kernel
        xp = jnp.pad(x, ((0, 0), (dil, dil), (dil, dil), (0, 0)))
        acc = jnp.zeros((B, H, W, Cout), jnp.float32)
        for kh in range(3):
            for kw in range(3):
                xs = xp[:, kh * dil:kh * dil + H, kw * dil:kw * dil + W, :]
                acc = acc + jnp.einsum("bhwc,co->bhwo", xs, w_eff[kh, kw],
                                       preferred_element_type=jnp.float32)
        return jnp.maximum(acc + shift[0], 0.0)

    o1 = conv_branch(params["w1"], params["s1"], params["b1"], 1)
    o2 = conv_branch(params["w2"], params["s2"], params["b2"], 2)
    s = (o1 + o2).mean(axis=(1, 2))                                 # (B, Cout)
    z = jnp.maximum(s @ (params["fc1_w"] * params["fc1_s"]) + params["fc1_b"], 0.0)
    ab = (z @ params["fc2_w"]).reshape(B, 2, Cout)
    a = jax.nn.softmax(ab, axis=1)
    o1q = o1.astype(jnp.bfloat16).astype(jnp.float32)
    o2q = o2.astype(jnp.bfloat16).astype(jnp.float32)
    V = o1q * a[:, 0][:, None, None, :] + o2q * a[:, 1][:, None, None, :]
    return jnp.transpose(V, (0, 3, 1, 2))


if __name__ == "__main__":
    B, C, H, W = 2, 4, 16, 16   # in_channels == out_channels (as in the paper)
    key = jax.random.PRNGKey(0)
    kx, kp = jax.random.split(key)
    x = jax.random.normal(kx, (B, C, H, W), jnp.float32)      # PyTorch NCHW input
    params = init_params(kp, in_channels=C, out_channels=C)

    out = jax.jit(skconv_forward)(x, params)
    out = jax.block_until_ready(out)

    ref = skconv_reference(x, params)
    assert out.shape == (B, C, H, W)
    assert jnp.allclose(out, ref, rtol=2e-3, atol=2e-3), "mismatch vs reference"
    print("KERNEL_OK")
</pallas_src>

<mosaic_0001>
module attributes {stable_mosaic.version = 11 : i64} {
  func.func @_branch_conv_kernel(%arg0: i32, %arg1: i32, %arg2: memref<1x128x128xbf16, #tpu.memory_space<vmem>>, %arg3: memref<1x128x128xbf16, #tpu.memory_space<vmem>>, %arg4: memref<128x128xbf16, #tpu.memory_space<vmem>>, %arg5: memref<128x128xbf16, #tpu.memory_space<vmem>>, %arg6: memref<1x128xf32, #tpu.memory_space<vmem>>, %arg7: memref<1x128xf32, #tpu.memory_space<vmem>>, %arg8: memref<1x128x128xbf16, #tpu.memory_space<vmem>>, %arg9: memref<1x128x128xbf16, #tpu.memory_space<vmem>>, %arg10: memref<1x1x1x128xf32, #tpu.memory_space<vmem>>) attributes {dimension_semantics = [#tpu.dimension_semantics<parallel>, #tpu.dimension_semantics<parallel>], iteration_bounds = array<i64: 2, 2>, scalar_prefetch = 0 : i64, scratch_operands = 0 : i64, tpu.core_type = #tpu.core_type<tc>, window_params = [{transform_indices = @transform_0, window_bounds = array<i64: 1, 128, 128>}, {transform_indices = @transform_1, window_bounds = array<i64: 1, 128, 128>}, {pipeline_mode = #tpu.pipeline_mode<synchronous>, transform_indices = @transform_2, window_bounds = array<i64: 128, 128>}, {pipeline_mode = #tpu.pipeline_mode<synchronous>, transform_indices = @transform_3, window_bounds = array<i64: 128, 128>}, {pipeline_mode = #tpu.pipeline_mode<synchronous>, transform_indices = @transform_4, window_bounds = array<i64: 1, 128>}, {pipeline_mode = #tpu.pipeline_mode<synchronous>, transform_indices = @transform_5, window_bounds = array<i64: 1, 128>}, {transform_indices = @transform_6, window_bounds = array<i64: 1, 128, 128>}, {transform_indices = @transform_7, window_bounds = array<i64: 1, 128, 128>}, {transform_indices = @transform_8, window_bounds = array<i64: 1, 1, 1, 128>}]} {
    %c0 = arith.constant 0 : index
    %c0_0 = arith.constant 0 : index
    %c0_1 = arith.constant 0 : index
    %0 = vector.load %arg2[%c0, %c0_0, %c0_1] : memref<1x128x128xbf16, #tpu.memory_space<vmem>>, vector<1x128x128xbf16>
    %1 = vector.shape_cast %0 : vector<1x128x128xbf16> to vector<128x128xbf16>
    %c0_2 = arith.constant 0 : index
    %c0_3 = arith.constant 0 : index
    %2 = vector.load %arg4[%c0_2, %c0_3] : memref<128x128xbf16, #tpu.memory_space<vmem>>, vector<128x128xbf16>
    %cst = arith.constant dense<0.000000e+00> : vector<128x128xf32>
    %3 = tpu.matmul %1, %2, %cst {dimension_numbers = #tpu.dot_dimension_numbers<[1], [0], [0], [1], [0, 0, 1, 1], [], []>} : vector<128x128xbf16>, vector<128x128xbf16>, vector<128x128xf32> -> vector<128x128xf32>
    %c0_4 = arith.constant 0 : index
    %c0_5 = arith.constant 0 : index
    %4 = vector.load %arg6[%c0_4, %c0_5] : memref<1x128xf32, #tpu.memory_space<vmem>>, vector<1x128xf32>
    %5 = vector.broadcast %4 : vector<1x128xf32> to vector<128x128xf32>
    %6 = arith.addf %3, %5 : vector<128x128xf32>
    %cst_6 = arith.constant 0.000000e+00 : f32
    %7 = vector.broadcast %cst_6 : f32 to vector<128x128xf32>
    %8 = arith.maximumf %6, %7 : vector<128x128xf32>
    %9 = arith.truncf %8 : vector<128x128xf32> to vector<128x128xbf16>
    %c0_7 = arith.constant 0 : index
    %c0_8 = arith.constant 0 : index
    %c0_9 = arith.constant 0 : index
    %10 = vector.load %arg8[%c0_7, %c0_8, %c0_9] : memref<1x128x128xbf16, #tpu.memory_space<vmem>>, vector<1x128x128xbf16>
    %11 = vector.shape_cast %10 : vector<1x128x128xbf16> to vector<128x128xbf16>
    %12 = vector.shape_cast %9 : vector<128x128xbf16> to vector<1x128x128xbf16>
    tpu.vector_store %arg8[%c0_7, %c0_8, %c0_9], %12 {strides = array<i32>} : memref<1x128x128xbf16, #tpu.memory_space<vmem>>, vector<1x128x128xbf16>,
    %cst_10 = arith.constant dense<0.000000e+00> : vector<128xf32>
    %13 = vector.multi_reduction <add>, %8, %cst_10 [0] : vector<128x128xf32> to vector<128xf32>
    %14 = vector.shape_cast %13 : vector<128xf32> to vector<1x128xf32>
    %c0_11 = arith.constant 0 : index
    %c0_12 = arith.constant 0 : index
    %c0_13 = arith.constant 0 : index
    %15 = vector.load %arg3[%c0_11, %c0_12, %c0_13] : memref<1x128x128xbf16, #tpu.memory_space<vmem>>, vector<1x128x128xbf16>
    %16 = vector.shape_cast %15 : vector<1x128x128xbf16> to vector<128x128xbf16>
    %c0_14 = arith.constant 0 : index
    %c0_15 = arith.constant 0 : index
    %17 = vector.load %arg5[%c0_14, %c0_15] : memref<128x128xbf16, #tpu.memory_space<vmem>>, vector<128x128xbf16>
    %cst_16 = arith.constant dense<0.000000e+00> : vector<128x128xf32>
    %18 = tpu.matmul %16, %17, %cst_16 {dimension_numbers = #tpu.dot_dimension_numbers<[1], [0], [0], [1], [0, 0, 1, 1], [], []>} : vector<128x128xbf16>, vector<128x128xbf16>, vector<128x128xf32> -> vector<128x128xf32>
    %c0_17 = arith.constant 0 : index
    %c0_18 = arith.constant 0 : index
    %19 = vector.load %arg7[%c0_17, %c0_18] : memref<1x128xf32, #tpu.memory_space<vmem>>, vector<1x128xf32>
    %20 = vector.broadcast %19 : vector<1x128xf32> to vector<128x128xf32>
    %21 = arith.addf %18, %20 : vector<128x128xf32>
    %cst_19 = arith.constant 0.000000e+00 : f32
    %22 = vector.broadcast %cst_19 : f32 to vector<128x128xf32>
    %23 = arith.maximumf %21, %22 : vector<128x128xf32>
    %24 = arith.truncf %23 : vector<128x128xf32> to vector<128x128xbf16>
    %c0_20 = arith.constant 0 : index
    %c0_21 = arith.constant 0 : index
    %c0_22 = arith.constant 0 : index
    %25 = vector.load %arg9[%c0_20, %c0_21, %c0_22] : memref<1x128x128xbf16, #tpu.memory_space<vmem>>, vector<1x128x128xbf16>
    %26 = vector.shape_cast %25 : vector<1x128x128xbf16> to vector<128x128xbf16>
    %27 = vector.shape_cast %24 : vector<128x128xbf16> to vector<1x128x128xbf16>
    tpu.vector_store %arg9[%c0_20, %c0_21, %c0_22], %27 {strides = array<i32>} : memref<1x128x128xbf16, #tpu.memory_space<vmem>>, vector<1x128x128xbf16>,
    %cst_23 = arith.constant dense<0.000000e+00> : vector<128xf32>
    %28 = vector.multi_reduction <add>, %23, %cst_23 [0] : vector<128x128xf32> to vector<128xf32>
    %29 = vector.shape_cast %28 : vector<128xf32> to vector<1x128xf32>
    %30 = arith.addf %14, %29 : vector<1x128xf32>
    %31 = vector.shape_cast %30 : vector<1x128xf32> to vector<1x1x1x128xf32>
    %c0_24 = arith.constant 0 : index
    %c0_25 = arith.constant 0 : index
    %c0_26 = arith.constant 0 : index
    %c0_27 = arith.constant 0 : index
    %32 = vector.load %arg10[%c0_24, %c0_25, %c0_26, %c0_27] : memref<1x1x1x128xf32, #tpu.memory_space<vmem>>, vector<1x1x1x128xf32>
    tpu.vector_store %arg10[%c0_24, %c0_25, %c0_26, %c0_27], %31 {strides = array<i32>} : memref<1x1x1x128xf32, #tpu.memory_space<vmem>>, vector<1x1x1x128xf32>,
    return
  }
  func.func @transform_0(%arg0: i32, %arg1: i32) -> (i32, i32, i32) {
    %c0_i32 = arith.constant 0 : i32
    %c0_i32_0 = arith.constant 0 : i32
    return %arg0, %arg1, %c0_i32 : i32, i32, i32
  }
  func.func @transform_1(%arg0: i32, %arg1: i32) -> (i32, i32, i32) {
    %c0_i32 = arith.constant 0 : i32
    %c0_i32_0 = arith.constant 0 : i32
    return %arg0, %arg1, %c0_i32 : i32, i32, i32
  }
  func.func @transform_2(%arg0: i32, %arg1: i32) -> (i32, i32) {
    %c0_i32 = arith.constant 0 : i32
    %c0_i32_0 = arith.constant 0 : i32
    %c0_i32_1 = arith.constant 0 : i32
    return %c0_i32, %c0_i32_0 : i32, i32
  }
  func.func @transform_3(%arg0: i32, %arg1: i32) -> (i32, i32) {
    %c0_i32 = arith.constant 0 : i32
    %c0_i32_0 = arith.constant 0 : i32
    %c0_i32_1 = arith.constant 0 : i32
    return %c0_i32, %c0_i32_0 : i32, i32
  }
  func.func @transform_4(%arg0: i32, %arg1: i32) -> (i32, i32) {
    %c0_i32 = arith.constant 0 : i32
    %c0_i32_0 = arith.constant 0 : i32
    %c0_i32_1 = arith.constant 0 : i32
    return %c0_i32, %c0_i32_0 : i32, i32
  }
  func.func @transform_5(%arg0: i32, %arg1: i32) -> (i32, i32) {
    %c0_i32 = arith.constant 0 : i32
    %c0_i32_0 = arith.constant 0 : i32
    %c0_i32_1 = arith.constant 0 : i32
    return %c0_i32, %c0_i32_0 : i32, i32
  }
  func.func @transform_6(%arg0: i32, %arg1: i32) -> (i32, i32, i32) {
    %c0_i32 = arith.constant 0 : i32
    %c0_i32_0 = arith.constant 0 : i32
    return %arg0, %arg1, %c0_i32 : i32, i32, i32
  }
  func.func @transform_7(%arg0: i32, %arg1: i32) -> (i32, i32, i32) {
    %c0_i32 = arith.constant 0 : i32
    %c0_i32_0 = arith.constant 0 : i32
    return %arg0, %arg1, %c0_i32 : i32, i32, i32
  }
  func.func @transform_8(%arg0: i32, %arg1: i32) -> (i32, i32, i32, i32) {
    %c0_i32 = arith.constant 0 : i32
    %c0_i32_0 = arith.constant 0 : i32
    %c0_i32_1 = arith.constant 0 : i32
    return %arg0, %arg1, %c0_i32, %c0_i32_0 : i32, i32, i32, i32
  }
}

module attributes {stable_mosaic.version = 11 : i64} {
  func.func @_attend_kernel(%arg0: i32, %arg1: i32, %arg2: memref<1x2x1x128xf32, #tpu.memory_space<vmem>>, %arg3: memref<128x32xf32, #tpu.memory_space<vmem>>, %arg4: memref<1x32xf32, #tpu.memory_space<vmem>>, %arg5: memref<32x256xf32, #tpu.memory_space<vmem>>, %arg6: memref<1x128x128xbf16, #tpu.memory_space<vmem>>, %arg7: memref<1x128x128xbf16, #tpu.memory_space<vmem>>, %arg8: memref<1x128x128xf32, #tpu.memory_space<vmem>>) attributes {dimension_semantics = [#tpu.dimension_semantics<parallel>, #tpu.dimension_semantics<parallel>], iteration_bounds = array<i64: 2, 2>, scalar_prefetch = 0 : i64, scratch_operands = 0 : i64, tpu.core_type = #tpu.core_type<tc>, window_params = [{transform_indices = @transform_0, window_bounds = array<i64: 1, 2, 1, 128>}, {pipeline_mode = #tpu.pipeline_mode<synchronous>, transform_indices = @transform_1, window_bounds = array<i64: 128, 32>}, {pipeline_mode = #tpu.pipeline_mode<synchronous>, transform_indices = @transform_2, window_bounds = array<i64: 1, 32>}, {pipeline_mode = #tpu.pipeline_mode<synchronous>, transform_indices = @transform_3, window_bounds = array<i64: 32, 256>}, {transform_indices = @transform_4, window_bounds = array<i64: 1, 128, 128>}, {transform_indices = @transform_5, window_bounds = array<i64: 1, 128, 128>}, {transform_indices = @transform_6, window_bounds = array<i64: 1, 128, 128>}]} {
    %c0 = arith.constant 0 : index
    %c0_0 = arith.constant 0 : index
    %c0_1 = arith.constant 0 : index
    %c0_2 = arith.constant 0 : index
    %0 = vector.load %arg2[%c0, %c0_0, %c0_1, %c0_2] : memref<1x2x1x128xf32, #tpu.memory_space<vmem>>, vector<1x2x1x128xf32>
    %1 = vector.shape_cast %0 : vector<1x2x1x128xf32> to vector<2x128xf32>
    %cst = arith.constant dense<0.000000e+00> : vector<128xf32>
    %2 = vector.multi_reduction <add>, %1, %cst [0] : vector<2x128xf32> to vector<128xf32>
    %3 = vector.shape_cast %2 : vector<128xf32> to vector<1x128xf32>
    %cst_3 = arith.constant 3.906250e-03 : f32
    %4 = vector.broadcast %cst_3 : f32 to vector<1x128xf32>
    %5 = arith.mulf %3, %4 : vector<1x128xf32>
    %c0_4 = arith.constant 0 : index
    %c0_5 = arith.constant 0 : index
    %6 = vector.load %arg3[%c0_4, %c0_5] : memref<128x32xf32, #tpu.memory_space<vmem>>, vector<128x32xf32>
    %cst_6 = arith.constant dense<0.000000e+00> : vector<1x32xf32>
    %7 = tpu.matmul %5, %6, %cst_6 {dimension_numbers = #tpu.dot_dimension_numbers<[1], [0], [0], [1], [0, 0, 1, 1], [], []>} : vector<1x128xf32>, vector<128x32xf32>, vector<1x32xf32> -> vector<1x32xf32>
    %c0_7 = arith.constant 0 : index
    %c0_8 = arith.constant 0 : index
    %8 = vector.load %arg4[%c0_7, %c0_8] : memref<1x32xf32, #tpu.memory_space<vmem>>, vector<1x32xf32>
    %9 = arith.addf %7, %8 : vector<1x32xf32>
    %cst_9 = arith.constant 0.000000e+00 : f32
    %10 = vector.broadcast %cst_9 : f32 to vector<1x32xf32>
    %11 = arith.maximumf %9, %10 : vector<1x32xf32>
    %c0_10 = arith.constant 0 : index
    %c0_11 = arith.constant 0 : index
    %12 = vector.load %arg5[%c0_10, %c0_11] : memref<32x256xf32, #tpu.memory_space<vmem>>, vector<32x256xf32>
    %cst_12 = arith.constant dense<0.000000e+00> : vector<1x256xf32>
    %13 = tpu.matmul %11, %12, %cst_12 {dimension_numbers = #tpu.dot_dimension_numbers<[1], [0], [0], [1], [0, 0, 1, 1], [], []>} : vector<1x32xf32>, vector<32x256xf32>, vector<1x256xf32> -> vector<1x256xf32>
    %14 = vector.extract_strided_slice %13 {offsets = [0, 0], sizes = [1, 128], strides = [1, 1]} : vector<1x256xf32> to vector<1x128xf32>
    %15 = vector.extract_strided_slice %13 {offsets = [0, 128], sizes = [1, 128], strides = [1, 1]} : vector<1x256xf32> to vector<1x128xf32>
    %16 = arith.maximumf %14, %15 : vector<1x128xf32>
    %17 = arith.subf %14, %16 : vector<1x128xf32>
    %18 = math.exp %17 : vector<1x128xf32>
    %19 = arith.subf %15, %16 : vector<1x128xf32>
    %20 = math.exp %19 : vector<1x128xf32>
    %21 = arith.addf %18, %20 : vector<1x128xf32>
    %cst_13 = arith.constant 1.000000e+00 : f32
    %22 = vector.broadcast %cst_13 : f32 to vector<1x128xf32>
    %23 = arith.divf %22, %21 : vector<1x128xf32>
    %24 = arith.mulf %18, %23 : vector<1x128xf32>
    %25 = arith.mulf %20, %23 : vector<1x128xf32>
    %c0_14 = arith.constant 0 : index
    %c0_15 = arith.constant 0 : index
    %c0_16 = arith.constant 0 : index
    %26 = vector.load %arg6[%c0_14, %c0_15, %c0_16] : memref<1x128x128xbf16, #tpu.memory_space<vmem>>, vector<1x128x128xbf16>
    %27 = vector.shape_cast %26 : vector<1x128x128xbf16> to vector<128x128xbf16>
    %28 = arith.extf %27 : vector<128x128xbf16> to vector<128x128xf32>
    %29 = vector.broadcast %24 : vector<1x128xf32> to vector<128x128xf32>
    %30 = arith.mulf %28, %29 : vector<128x128xf32>
    %c0_17 = arith.constant 0 : index
    %c0_18 = arith.constant 0 : index
    %c0_19 = arith.constant 0 : index
    %31 = vector.load %arg7[%c0_17, %c0_18, %c0_19] : memref<1x128x128xbf16, #tpu.memory_space<vmem>>, vector<1x128x128xbf16>
    %32 = vector.shape_cast %31 : vector<1x128x128xbf16> to vector<128x128xbf16>
    %33 = arith.extf %32 : vector<128x128xbf16> to vector<128x128xf32>
    %34 = vector.broadcast %25 : vector<1x128xf32> to vector<128x128xf32>
    %35 = arith.mulf %33, %34 : vector<128x128xf32>
    %36 = arith.addf %30, %35 : vector<128x128xf32>
    %c0_20 = arith.constant 0 : index
    %c0_21 = arith.constant 0 : index
    %c0_22 = arith.constant 0 : index
    %37 = vector.load %arg8[%c0_20, %c0_21, %c0_22] : memref<1x128x128xf32, #tpu.memory_space<vmem>>, vector<1x128x128xf32>
    %38 = vector.shape_cast %37 : vector<1x128x128xf32> to vector<128x128xf32>
    %39 = vector.shape_cast %36 : vector<128x128xf32> to vector<1x128x128xf32>
    tpu.vector_store %arg8[%c0_20, %c0_21, %c0_22], %39 {strides = array<i32>} : memref<1x128x128xf32, #tpu.memory_space<vmem>>, vector<1x128x128xf32>,
    return
  }
  func.func @transform_0(%arg0: i32, %arg1: i32) -> (i32, i32, i32, i32) {
    %c0_i32 = arith.constant 0 : i32
    %c0_i32_0 = arith.constant 0 : i32
    %c0_i32_1 = arith.constant 0 : i32
    %c0_i32_2 = arith.constant 0 : i32
    return %arg0, %c0_i32, %c0_i32_0, %c0_i32_1 : i32, i32, i32, i32
  }
  func.func @transform_1(%arg0: i32, %arg1: i32) -> (i32, i32) {
    %c0_i32 = arith.constant 0 : i32
    %c0_i32_0 = arith.constant 0 : i32
    %c0_i32_1 = arith.constant 0 : i32
    return %c0_i32, %c0_i32_0 : i32, i32
  }
  func.func @transform_2(%arg0: i32, %arg1: i32) -> (i32, i32) {
    %c0_i32 = arith.constant 0 : i32
    %c0_i32_0 = arith.constant 0 : i32
    %c0_i32_1 = arith.constant 0 : i32
    return %c0_i32, %c0_i32_0 : i32, i32
  }
  func.func @transform_3(%arg0: i32, %arg1: i32) -> (i32, i32) {
    %c0_i32 = arith.constant 0 : i32
    %c0_i32_0 = arith.constant 0 : i32
    %c0_i32_1 = arith.constant 0 : i32
    return %c0_i32, %c0_i32_0 : i32, i32
  }
  func.func @transform_4(%arg0: i32, %arg1: i32) -> (i32, i32, i32) {
    %c0_i32 = arith.constant 0 : i32
    %c0_i32_0 = arith.constant 0 : i32
    return %arg0, %arg1, %c0_i32 : i32, i32, i32
  }
  func.func @transform_5(%arg0: i32, %arg1: i32) -> (i32, i32, i32) {
    %c0_i32 = arith.constant 0 : i32
    %c0_i32_0 = arith.constant 0 : i32
    return %arg0, %arg1, %c0_i32 : i32, i32, i32
  }
  func.func @transform_6(%arg0: i32, %arg1: i32) -> (i32, i32, i32) {
    %c0_i32 = arith.constant 0 : i32
    %c0_i32_0 = arith.constant 0 : i32
    return %arg0, %arg1, %c0_i32 : i32, i32, i32
  }
}

</mosaic_0001>

<bundles_post_ra>
// kernel: skconv_forward.2
= control target key start
LH: loop header
LB: loop body
LE: loop exit
PB: predicated region body
PF: predicated region fallthrough
CT: control target
= control target key end

     0   :  { %s1541_s27 = smov 0   ;;  %s1543_s28 = smov 0   ;;  %s1866_s0 = inlined_call_operand.vmem [shape: bf16[2,256,128], index: 0, kind: input, shape index: {}]   ;;  %s1867_s1 = inlined_call_operand.vmem [shape: bf16[2,256,128], index: 1, kind: input, shape index: {}]   ;;  %s1868_s2 = inlined_call_operand.vmem [shape: bf16[128,128], index: 2, kind: input, shape index: {}]   ;;  %s1869_s3 = inlined_call_operand.vmem [shape: bf16[128,128], index: 3, kind: input, shape index: {}]   ;;  %s1870_s4 = inlined_call_operand.vmem [shape: f32[1,128], index: 4, kind: input, shape index: {}]   ;;  %s1871_s5 = inlined_call_operand.vmem [shape: f32[1,128], index: 5, kind: input, shape index: {}]   ;;  %s1872_s6 = inlined_call_operand.vmem [shape: bf16[2,256,128], index: 6, kind: output, shape index: {0}]   ;;  %s1873_s7 = inlined_call_operand.vmem [shape: bf16[2,256,128], index: 7, kind: output, shape index: {1}]   ;;  %s1874_s8 = inlined_call_operand.vmem [shape: f32[2,2,1,128], index: 8, kind: output, shape index: {2}]  }
   0x1   :  { %s1545_s29 = smov 0   ;;  %s1547_s30 = smov 0  }
   0x2   :  { %s1549_s9 = smov 0  }
   0x3 LB: > { %s28_s10 = sadd.s32 1, %s1486_s29  ;;  %s31_s11 = sadd.s32 1, %s1490_s30  ;;  %s1494_s9 = sphi %s1549_s9, %s19_s9   ;;  %s1490_s30 = sphi %s1547_s30, %s1878_s30   ;;  %s1486_s29 = sphi %s1545_s29, %s1877_s29   ;;  %s1482_s28 = sphi %s1543_s28, %s1876_s28   ;;  %s1478_s27 = sphi %s1541_s27, %s1875_s27  }
   0x4   : > { %p29_p0 = scmp.ge.s32.totalorder %s28_s10, 2  ;;  %p1128_p1 = scmp.ge.s32.totalorder %s1494_s9, 1 }
   0x5   : > { %p309_p2 = scmp.lt.s32.totalorder %s1494_s9, 5 }
   0x6   : > { %s1880_s10 = smov (%p29_p0, %s28_s10), 0  ;;  %s1882_s11 = smov (!%p29_p0, %s31_s11), %s1490_s30 }
   0x7   : > { %p310_p3 = pnand %p1128_p1, %p309_p2  ;;  %p33_p4 = scmp.ge.s32.totalorder %s1882_s11, 2 }
   0x8   : > { %s1129_s24 = sshll.u32 (!%p310_p3), %s1478_s27, 4  ;;  %p377_p5 = scmp.lt.s32.totalorder (!%p310_p3), %s1482_s28, 1 }
   0x9   : > { %s1884_s11 = smov (%p33_p4, %s1882_s11), 0  ;;  %313 = sbr.rel (%p310_p3) target bundleno = 266 (0x10a), region = 44 }
   0xa   : > { %p379_p6 = scmp.lt.s32.totalorder (!%p310_p3), %s1129_s24, 31  ;;  %p418_p7 = scmp.lt.s32.totalorder (!%p310_p3), %s1478_s27, 1 }
   0xe   : > { %v1287_v0 = vld [vmem:[%s1868_s2 + $0x38] sm:$0xff]  ;;  %v1286_v2 = vld [vmem:[%s1868_s2 + $0x30] sm:$0xff]  ;;  %v1285_v4 = vld [vmem:[%s1868_s2 + $0x28] sm:$0xff]  ;;  %s1886_s28 = smov (!%p377_p5, %s1482_s28), 1  ;;  %s1888_s24 = smov (!%p379_p6, %s1129_s24), 31 }
   0xf   : > { %v1303_v1 = vld [vmem:[%s1869_s3 + $0x38] sm:$0xff]  ;;  %555 = vmatpush.bf16.msra.mxu0 %v1287_v0  ;;  %v1302_v3 = vld [vmem:[%s1869_s3 + $0x30] sm:$0xff]  ;;  %1398 = vmatpush.bf16.msra.mxu2 %v1287_v0  ;;  %v1301_v5 = vld [vmem:[%s1869_s3 + $0x28] sm:$0xff]  ;;  %s1130_s18 = sshll.u32 %s1886_s28, 5  ;;  %s1890_s27 = smov (!%p418_p7, %s1478_s27), 1 }
  0x10   : > { %805 = vmatpush.bf16.msra.mxu1 %v1303_v1  ;;  %1406 = vmatpush.bf16.msra.mxu3 %v1303_v1  ;;  %v1284_v6 = vld [vmem:[%s1868_s2 + $0x20] sm:$0xff]  ;;  %v1283_v8 = vld [vmem:[%s1868_s2 + $0x18] sm:$0xff]  ;;  %v1282_v10 = vld [vmem:[%s1868_s2 + $0x10] sm:$0xff]  ;;  %s382_s23 = sadd.s32 %s1130_s18, %s1888_s24 }
  0x11   : > { %v1300_v7 = vld [vmem:[%s1869_s3 + $0x20] sm:$0xff]  ;;  %v1299_v9 = vld [vmem:[%s1869_s3 + $0x18] sm:$0xff]  ;;  %v1298_v11 = vld [vmem:[%s1869_s3 + $0x10] sm:$0xff]  ;;  %s1623_s14 = sshll.u32 %s382_s23, 2 }
  0x12   : > { %v1281_v12 = vld [vmem:[%s1868_s2 + $0x8] sm:$0xff]  ;;  %v1280_v14 = vld [vmem:[%s1868_s2] sm:$0xff]  ;;  %s1635_s20 = scalar_lea.vmem %s1866_s0, %s1623_s14  ;;  %s1641_s23 = scalar_lea.vmem %s1867_s1, %s1623_s14 }
  0x13   : > { %556 = vmatpush.bf16.msra.mxu0 %v1286_v2  ;;  %1399 = vmatpush.bf16.msra.mxu2 %v1286_v2  ;;  %v1297_v13 = vld [vmem:[%s1869_s3 + $0x8] sm:$0xff]  ;;  %v1296_v15 = vld [vmem:[%s1869_s3] sm:$0xff]  ;;  %v1274_v24 = vld [vmem:[%s1635_s20 + $0x10] sm:$0xff]  ;;  %s1689_s16 = scalar_lea.vmem %s1872_s6, %s1623_s14  ;;  %s1705_s19 = scalar_lea.vmem %s1873_s7, %s1623_s14 }
  0x14   : > { %806 = vmatpush.bf16.msra.mxu1 %v1302_v3  ;;  %1407 = vmatpush.bf16.msra.mxu3 %v1302_v3  ;;  %v1272_v16 = vld [vmem:[%s1635_s20] sm:$0xff]  ;;  %v1273_v20 = vld [vmem:[%s1635_s20 + $0x8] sm:$0xff]  ;;  %v1290_v25 = vld [vmem:[%s1641_s23 + $0x10] sm:$0xff]  ;;  %s1141_s14 = sshll.u32 %s1886_s28, 1 }
  0x15   : > { %v1288_v17 = vld [vmem:[%s1641_s23] sm:$0xff]  ;;  %v1289_v21 = vld [vmem:[%s1641_s23 + $0x8] sm:$0xff]  ;;  %v1278_v26 = vld [vmem:[%s1635_s20 + $0x30] sm:$0xff] }
  0x16   : > { %v1276_v18 = vld [vmem:[%s1635_s20 + $0x20] sm:$0xff]  ;;  %v1277_v22 = vld [vmem:[%s1635_s20 + $0x28] sm:$0xff]  ;;  %v1294_v27 = vld [vmem:[%s1641_s23 + $0x30] sm:$0xff] }
  0x17   : > { %557 = vmatpush.bf16.msra.mxu0 %v1285_v4  ;;  %1400 = vmatpush.bf16.msra.mxu2 %v1285_v4  ;;  %v1292_v19 = vld [vmem:[%s1641_s23 + $0x20] sm:$0xff]  ;;  %v1293_v23 = vld [vmem:[%s1641_s23 + $0x28] sm:$0xff]  ;;  %v1275_v28 = vld [vmem:[%s1635_s20 + $0x18] sm:$0xff] }
  0x18   : > { %807 = vmatpush.bf16.msra.mxu1 %v1301_v5  ;;  %1408 = vmatpush.bf16.msra.mxu3 %v1301_v5  ;;  %v1291_v29 = vld [vmem:[%s1641_s23 + $0x18] sm:$0xff]  ;;  %v1662_v34 = vld [vmem:[%s1870_s4] ss:$0 sm:$0xff] }
  0x19   : > { %v1279_v30 = vld [vmem:[%s1635_s20 + $0x38] sm:$0xff]  ;;  %v1667_v35 = vld [vmem:[%s1871_s5] ss:$0 sm:$0xff]  ;;  %s421_s20 = sadd.s32 %s1141_s14, %s1890_s27 }
  0x1a   : > { %v1295_v31 = vld [vmem:[%s1641_s23 + $0x38] sm:$0xff]  ;;  %s422_s23 = scalar_lea.vmem %s1874_s8, %s421_s20 }
  0x1b   : > { %558 = vmatpush.bf16.msra.mxu0 %v1284_v6  ;;  %1401 = vmatpush.bf16.msra.mxu2 %v1284_v6 }
  0x1c   : > { %808 = vmatpush.bf16.msra.mxu1 %v1300_v7  ;;  %1409 = vmatpush.bf16.msra.mxu3 %v1300_v7 }
  0x1f   : > { %559 = vmatpush.bf16.msra.mxu0 %v1283_v8  ;;  %1402 = vmatpush.bf16.msra.mxu2 %v1283_v8 }
  0x20   : > { %809 = vmatpush.bf16.msra.mxu1 %v1299_v9  ;;  %1410 = vmatpush.bf16.msra.mxu3 %v1299_v9 }
  0x23   : > { %560 = vmatpush.bf16.msra.mxu0 %v1282_v10  ;;  %1403 = vmatpush.bf16.msra.mxu2 %v1282_v10 }
  0x24   : > { %810 = vmatpush.bf16.msra.mxu1 %v1298_v11  ;;  %1411 = vmatpush.bf16.msra.mxu3 %v1298_v11 }
  0x27   : > { %561 = vmatpush.bf16.msra.mxu0 %v1281_v12  ;;  %1404 = vmatpush.bf16.msra.mxu2 %v1281_v12 }
  0x28   : > { %811 = vmatpush.bf16.msra.mxu1 %v1297_v13  ;;  %1412 = vmatpush.bf16.msra.mxu3 %v1297_v13 }
  0x2b   : > { %562 = vmatpush.bf16.msra.mxu0 %v1280_v14  ;;  %1405 = vmatpush.bf16.msra.mxu2 %v1280_v14 }
  0x2c   : > { %812 = vmatpush.bf16.msra.mxu1 %v1296_v15  ;;  %1413 = vmatpush.bf16.msra.mxu3 %v1296_v15 }
  0x2e   : > { %563 = vmatmul.bf16.vlgmr.msra.gmra.mxu0 %v1272_v16  ;;  %583 = vmatmul.bf16.vlgmr.msra.gmra.mxu2 %v1276_v18 }
  0x2f   : > { %813 = vmatmul.bf16.vlgmr.msra.gmra.mxu1 %v1288_v17  ;;  %833 = vmatmul.bf16.vlgmr.msra.gmra.mxu3 %v1292_v19 }
  0x3e   : > { %568 = vmatmul.bf16.gmra.mxu0 %v1273_v20  ;;  %588 = vmatmul.bf16.gmra.mxu2 %v1277_v22 }
  0x3f   : > { %818 = vmatmul.bf16.gmra.mxu1 %v1289_v21  ;;  %838 = vmatmul.bf16.gmra.mxu3 %v1293_v23 }
  0x4e   : > { %573 = vmatmul.bf16.gmra.mxu0 %v1274_v24  ;;  %593 = vmatmul.bf16.gmra.mxu2 %v1278_v26 }
  0x4f   : > { %823 = vmatmul.bf16.gmra.mxu1 %v1290_v25  ;;  %843 = vmatmul.bf16.gmra.mxu3 %v1294_v27 }
  0x5e   : > { %578 = vmatmul.bf16.gmra.mxu0 %v1275_v28  ;;  %598 = vmatmul.bf16.gmra.mxu2 %v1279_v30 }
  0x5f   : > { %828 = vmatmul.bf16.gmra.mxu1 %v1291_v29  ;;  %848 = vmatmul.bf16.gmra.mxu3 %v1295_v31 }
  0xab   : > { %v564_v32 = vpop.f32.mrf.mxu0 }
  0xac   : > { %v814_v33 = vpop.f32.mrf.mxu1  ;;  %v1670_v36 = vadd.f32 %v1662_v34, %v564_v32 }
  0xad   : > { %v1673_v37 = vadd.f32 %v1667_v35, %v814_v33 }
  0xae   : > { %v604_v44 = vmax.f32 %v1670_v36, 0.0 }
  0xaf   : > { %v854_v45 = vmax.f32 %v1673_v37, 0.0 }
  0xb1   : > { %v584_v38 = vpop.f32.mrf.mxu2 }
  0xb2   : > { %v834_v39 = vpop.f32.mrf.mxu3  ;;  %v1692_v48 = vadd.f32 %v1662_v34, %v584_v38 }
  0xb3   : > { %v566_v40 = vpop.f32.mrf.mxu0  ;;  %v1695_v49 = vadd.f32 %v1667_v35, %v834_v39 }
  0xb4   : > { %v816_v41 = vpop.f32.mrf.mxu1  ;;  %v1676_v42 = vadd.f32 %v1662_v34, %v566_v40  ;;  %v612_v54 = vmax.f32 %v1692_v48, 0.0 }
  0xb5   : > { %v1679_v43 = vadd.f32 %v1667_v35, %v816_v41  ;;  %v862_v55 = vmax.f32 %v1695_v49, 0.0 }
  0xb6   : > { %v605_v46 = vmax.f32 %v1676_v42, 0.0 }
  0xb7   : > { %v855_v47 = vmax.f32 %v1679_v43, 0.0 }
  0xb8   : > { %v1307_v50 = vpack.c.bf16 %v605_v46, %v604_v44 }
  0xb9   : > { %v1347_v51 = vpack.c.bf16 %v855_v47, %v854_v45  ;;  %v586_v52 = vpop.f32.mrf.mxu2 }
  0xba   : > { %1308 = vst [vmem:[%s1689_s16] sm:$0xff] %v1307_v50   ;;  %v836_v53 = vpop.f32.mrf.mxu3  ;;  %v1716_v57 = vadd.f32 %v1662_v34, %v586_v52 }
  0xbb   : > { %1348 = vst [vmem:[%s1705_s19] sm:$0xff] %v1347_v51   ;;  %v569_v56 = vpop.f32.mrf.mxu0  ;;  %v1719_v59 = vadd.f32 %v1667_v35, %v836_v53 }
  0xbc   : > { %v819_v58 = vpop.f32.mrf.mxu1  ;;  %v613_v60 = vmax.f32 %v1716_v57, 0.0  ;;  %v1733_v0 = vadd.f32 %v1662_v34, %v569_v56 }
  0xbd   : > { %v863_v61 = vmax.f32 %v1719_v59, 0.0  ;;  %v1736_v1 = vadd.f32 %v1667_v35, %v819_v58 }
  0xbe   : > { %v1327_v62 = vpack.c.bf16 %v613_v60, %v612_v54  ;;  %v606_v8 = vmax.f32 %v1733_v0, 0.0 }
  0xbf   : > { %v1367_v63 = vpack.c.bf16 %v863_v61, %v862_v55  ;;  %v856_v9 = vmax.f32 %v1736_v1, 0.0 }
  0xc0   : > { %1387 = vst [vmem:[%s1689_s16 + $0x20] sm:$0xff] %v1327_v62  }
  0xc1   : > { %1394 = vst [vmem:[%s1705_s19 + $0x20] sm:$0xff] %v1367_v63   ;;  %v589_v2 = vpop.f32.mrf.mxu2 }
  0xc2   : > { %v839_v3 = vpop.f32.mrf.mxu3  ;;  %v1750_v12 = vadd.f32 %v1662_v34, %v589_v2 }
  0xc3   : > { %v571_v4 = vpop.f32.mrf.mxu0  ;;  %v1753_v13 = vadd.f32 %v1667_v35, %v839_v3 }
  0xc4   : > { %v821_v5 = vpop.f32.mrf.mxu1  ;;  %v1740_v6 = vadd.f32 %v1662_v34, %v571_v4  ;;  %v614_v18 = vmax.f32 %v1750_v12, 0.0 }
  0xc5   : > { %v1743_v7 = vadd.f32 %v1667_v35, %v821_v5  ;;  %v864_v19 = vmax.f32 %v1753_v13, 0.0 }
  0xc6   : > { %v607_v10 = vmax.f32 %v1740_v6, 0.0  ;;  %v652_v6 = vadd.f32 %v605_v46, %v604_v44 }
  0xc7   : > { %v857_v11 = vmax.f32 %v1743_v7, 0.0  ;;  %v902_v7 = vadd.f32 %v855_v47, %v854_v45 }
  0xc8   : > { %v1312_v14 = vpack.c.bf16 %v607_v10, %v606_v8 }
  0xc9   : > { %v1352_v15 = vpack.c.bf16 %v857_v11, %v856_v9  ;;  %v591_v16 = vpop.f32.mrf.mxu2 }
  0xca   : > { %1384 = vst [vmem:[%s1689_s16 + $0x8] sm:$0xff] %v1312_v14   ;;  %v841_v17 = vpop.f32.mrf.mxu3  ;;  %v1760_v21 = vadd.f32 %v1662_v34, %v591_v16  ;;  %v653_v16 = vadd.f32 %v652_v6, %v606_v8 }
  0xcb   : > { %1391 = vst [vmem:[%s1705_s19 + $0x8] sm:$0xff] %v1352_v15   ;;  %v574_v20 = vpop.f32.mrf.mxu0  ;;  %v1763_v23 = vadd.f32 %v1667_v35, %v841_v17  ;;  %v903_v17 = vadd.f32 %v902_v7, %v856_v9 }
  0xcc   : > { %v824_v22 = vpop.f32.mrf.mxu1  ;;  %v615_v24 = vmax.f32 %v1760_v21, 0.0  ;;  %v575_v28 = vadd.f32 %v1662_v34, %v574_v20  ;;  %v654_v42 = vadd.f32 %v653_v16, %v607_v10 }
  0xcd   : > { %v865_v25 = vmax.f32 %v1763_v23, 0.0  ;;  %v825_v29 = vadd.f32 %v1667_v35, %v824_v22  ;;  %v904_v43 = vadd.f32 %v903_v17, %v857_v11 }
  0xce   : > { %v1332_v26 = vpack.c.bf16 %v615_v24, %v614_v18  ;;  %v608_v40 = vmax.f32 %v575_v28, 0.0 }
  0xcf   : > { %v1372_v27 = vpack.c.bf16 %v865_v25, %v864_v19  ;;  %v858_v41 = vmax.f32 %v825_v29, 0.0 }
  0xd0   : > { %1388 = vst [vmem:[%s1689_s16 + $0x28] sm:$0xff] %v1332_v26   ;;  %v655_v44 = vadd.f32 %v654_v42, %v608_v40 }
  0xd1   : > { %1395 = vst [vmem:[%s1705_s19 + $0x28] sm:$0xff] %v1372_v27   ;;  %v594_v30 = vpop.f32.mrf.mxu2  ;;  %v905_v45 = vadd.f32 %v904_v43, %v858_v41 }
  0xd2   : > { %v844_v31 = vpop.f32.mrf.mxu3  ;;  %v1782_v52 = vadd.f32 %v1662_v34, %v594_v30 }
  0xd3   : > { %v576_v32 = vpop.f32.mrf.mxu0  ;;  %v1785_v53 = vadd.f32 %v1667_v35, %v844_v31 }
  0xd4   : > { %v826_v33 = vpop.f32.mrf.mxu1  ;;  %v577_v38 = vadd.f32 %v1662_v34, %v576_v32  ;;  %v616_v0 = vmax.f32 %v1782_v52, 0.0 }
  0xd5   : > { %v827_v39 = vadd.f32 %v1667_v35, %v826_v33  ;;  %v866_v1 = vmax.f32 %v1785_v53, 0.0 }
  0xd6   : > { %v609_v50 = vmax.f32 %v577_v38, 0.0 }
  0xd7   : > { %v859_v51 = vmax.f32 %v827_v39, 0.0 }
  0xd8   : > { %v1317_v56 = vpack.c.bf16 %v609_v50, %v608_v40  ;;  %v656_v28 = vadd.f32 %v655_v44, %v609_v50 }
  0xd9   : > { %v1357_v58 = vpack.c.bf16 %v859_v51, %v858_v41  ;;  %v596_v62 = vpop.f32.mrf.mxu2  ;;  %v906_v29 = vadd.f32 %v905_v45, %v859_v51 }
  0xda   : > { %1385 = vst [vmem:[%s1689_s16 + $0x10] sm:$0xff] %v1317_v56   ;;  %v846_v63 = vpop.f32.mrf.mxu3  ;;  %v1792_v3 = vadd.f32 %v1662_v34, %v596_v62 }
  0xdb   : > { %1392 = vst [vmem:[%s1705_s19 + $0x10] sm:$0xff] %v1357_v58   ;;  %v579_v2 = vpop.f32.mrf.mxu0  ;;  %v1795_v5 = vadd.f32 %v1667_v35, %v846_v63 }
  0xdc   : > { %v829_v4 = vpop.f32.mrf.mxu1  ;;  %v617_v14 = vmax.f32 %v1792_v3, 0.0  ;;  %v580_v20 = vadd.f32 %v1662_v34, %v579_v2 }
  0xdd   : > { %v867_v15 = vmax.f32 %v1795_v5, 0.0  ;;  %v830_v22 = vadd.f32 %v1667_v35, %v829_v4 }
  0xde   : > { %v1337_v36 = vpack.c.bf16 %v617_v14, %v616_v0  ;;  %v610_v46 = vmax.f32 %v580_v20, 0.0 }
  0xdf   : > { %v1377_v37 = vpack.c.bf16 %v867_v15, %v866_v1  ;;  %v860_v47 = vmax.f32 %v830_v22, 0.0 }
  0xe0   : > { %1389 = vst [vmem:[%s1689_s16 + $0x30] sm:$0xff] %v1337_v36   ;;  %v657_v32 = vadd.f32 %v656_v28, %v610_v46 }
  0xe1   : > { %1396 = vst [vmem:[%s1705_s19 + $0x30] sm:$0xff] %v1377_v37   ;;  %v599_v8 = vpop.f32.mrf.mxu2  ;;  %v907_v10 = vadd.f32 %v906_v29, %v860_v47 }
  0xe2   : > { %v849_v9 = vpop.f32.mrf.mxu3  ;;  %v600_v38 = vadd.f32 %v1662_v34, %v599_v8 }
  0xe3   : > { %v581_v26 = vpop.f32.mrf.mxu0  ;;  %v850_v39 = vadd.f32 %v1667_v35, %v849_v9 }
  0xe4   : > { %v831_v27 = vpop.f32.mrf.mxu1  ;;  %v582_v30 = vadd.f32 %v1662_v34, %v581_v26  ;;  %v618_v2 = vmax.f32 %v600_v38, 0.0 }
  0xe5   : > { %v832_v31 = vadd.f32 %v1667_v35, %v831_v27  ;;  %v868_v3 = vmax.f32 %v850_v39, 0.0 }
  0xe6   : > { %v611_v11 = vmax.f32 %v582_v30, 0.0 }
  0xe7   : > { %v861_v33 = vmax.f32 %v832_v31, 0.0 }
  0xe8   : > { %v1322_v40 = vpack.c.bf16 %v611_v11, %v610_v46  ;;  %v658_v41 = vadd.f32 %v657_v32, %v611_v11 }
  0xe9   : > { %v1362_v56 = vpack.c.bf16 %v861_v33, %v860_v47  ;;  %v908_v58 = vadd.f32 %v907_v10, %v861_v33  ;;  %v601_v62 = vpop.f32.mrf.mxu2 }
  0xea   : > { %1386 = vst [vmem:[%s1689_s16 + $0x18] sm:$0xff] %v1322_v40   ;;  %v659_v50 = vadd.f32 %v658_v41, %v612_v54  ;;  %v851_v63 = vpop.f32.mrf.mxu3  ;;  %v602_v4 = vadd.f32 %v1662_v34, %v601_v62 }
  0xeb   : > { %v909_v51 = vadd.f32 %v908_v58, %v862_v55  ;;  %1393 = vst [vmem:[%s1705_s19 + $0x18] sm:$0xff] %v1362_v56   ;;  %v852_v5 = vadd.f32 %v1667_v35, %v851_v63 }
  0xec   : > { %v660_v6 = vadd.f32 %v659_v50, %v613_v60  ;;  %v619_v54 = vmax.f32 %v602_v4, 0.0 }
  0xed   : > { %v910_v48 = vadd.f32 %v909_v51, %v863_v61  ;;  %v869_v49 = vmax.f32 %v852_v5, 0.0 }
  0xee   : > { %v661_v55 = vadd.f32 %v660_v6, %v614_v18  ;;  %v1342_v16 = vpack.c.bf16 %v619_v54, %v618_v2 }
  0xef   : > { %v911_v7 = vadd.f32 %v910_v48, %v864_v19  ;;  %v1382_v17 = vpack.c.bf16 %v869_v49, %v868_v3 }
  0xf0   : > { %v662_v34 = vadd.f32 %v661_v55, %v615_v24  ;;  %1390 = vst [vmem:[%s1689_s16 + $0x38] sm:$0xff] %v1342_v16  }
  0xf1   : > { %v912_v35 = vadd.f32 %v911_v7, %v865_v25  ;;  %1397 = vst [vmem:[%s1705_s19 + $0x38] sm:$0xff] %v1382_v17  }
  0xf2   : > { %v663_v57 = vadd.f32 %v662_v34, %v616_v0 }
  0xf3   : > { %v913_v59 = vadd.f32 %v912_v35, %v866_v1 }
  0xf4   : > { %v664_v60 = vadd.f32 %v663_v57, %v617_v14 }
  0xf5   : > { %v914_v61 = vadd.f32 %v913_v59, %v867_v15 }
  0xf6   : > { %v665_v12 = vadd.f32 %v664_v60, %v618_v2 }
  0xf7   : > { %v915_v13 = vadd.f32 %v914_v61, %v868_v3 }
  0xf8   : > { %v666_v18 = vadd.f32 %v665_v12, %v619_v54 }
  0xf9   : > { %v916_v19 = vadd.f32 %v915_v13, %v869_v49 }
  0xfa   : > { %v667_v21 = vrot.slane %v666_v18, 4 }
  0xfb   : > { %v917_v23 = vrot.slane %v916_v19, 4 }
  0xfc   : > { %v668_v24 = vadd.f32 %v667_v21, %v666_v18 }
  0xfd   : > { %v918_v25 = vadd.f32 %v917_v23, %v916_v19 }
  0xfe   : > { %v669_v20 = vrot.slane %v668_v24, 2 }
  0xff   : > { %v919_v52 = vrot.slane %v918_v25, 2 }
 0x100   : > { %v670_v0 = vadd.f32 %v669_v20, %v668_v24 }
 0x101   : > { %v920_v53 = vadd.f32 %v919_v52, %v918_v25 }
 0x102   : > { %v671_v1 = vrot.slane %v670_v0, 1 }
 0x103   : > { %v921_v22 = vrot.slane %v920_v53, 1 }
 0x104   : > { %v672_v14 = vadd.f32 %v671_v1, %v670_v0 }
 0x105   : > { %v922_v15 = vadd.f32 %v921_v22, %v920_v53 }
 0x107   : > { %v923_v36 = vadd.f32 %v922_v15, %v672_v14 }
 0x109   : > { %924 = vst [vmem:[%s422_s23] sm:$0x1] %v923_v36 }
 0x10a PF: > { %s19_s9 = sadd.s32 1, %s1494_s9   ;;  %s1875_s27 = smov %s1486_s29 }
 0x10b   : > { %p16_p8 = scmp.ge.s32.totalorder %s19_s9, 6   ;;  %s1876_s28 = smov %s1490_s30 }
 0x10c   : > { %s1877_s29 = smov %s1880_s10  ;;  %s1878_s30 = smov %s1884_s11 }
 0x10d   :  { %18 = sbr.rel (!%p16_p8) target bundleno = 3 (0x3), region = 101 }

// kernel: skconv_forward.3
= control target key start
LH: loop header
LB: loop body
LE: loop exit
PB: predicated region body
PF: predicated region fallthrough
CT: control target
= control target key end

     0   :  { %s945_s21 = smov 0   ;;  %s947_s22 = smov 0   ;;  %s1174_s0 = inlined_call_operand.vmem [shape: f32[2,2,1,128], index: 0, kind: input, shape index: {}]   ;;  %s1175_s1 = inlined_call_operand.vmem [shape: f32[128,32], index: 1, kind: input, shape index: {}]   ;;  %s1176_s2 = inlined_call_operand.vmem [shape: f32[1,32], index: 2, kind: input, shape index: {}]   ;;  %s1177_s3 = inlined_call_operand.vmem [shape: f32[32,256], index: 3, kind: input, shape index: {}]   ;;  %s1178_s4 = inlined_call_operand.vmem [shape: bf16[2,256,128], index: 4, kind: input, shape index: {}]   ;;  %s1179_s5 = inlined_call_operand.vmem [shape: bf16[2,256,128], index: 5, kind: input, shape index: {}]   ;;  %s1180_s6 = inlined_call_operand.vmem [shape: f32[2,256,128], index: 6, kind: output, shape index: {}]  }
   0x1   :  { %s949_s23 = smov 0   ;;  %s951_s24 = smov 0  }
   0x2   :  { %s953_s25 = smov 0  }
   0x3 LB: > { %s25_s26 = sadd.s32 1, %s900_s23  ;;  %s28_s27 = sadd.s32 1, %s904_s24  ;;  %s908_s25 = sphi %s953_s25, %s16_s25   ;;  %s904_s24 = sphi %s951_s24, %s1184_s24   ;;  %s900_s23 = sphi %s949_s23, %s1183_s23   ;;  %s896_s22 = sphi %s947_s22, %s1182_s22   ;;  %s892_s21 = sphi %s945_s21, %s1181_s21  }
   0x4   : > { %p26_p0 = scmp.ge.s32.totalorder %s25_s26, 2  ;;  %p731_p1 = scmp.ge.s32.totalorder %s908_s25, 1 }
   0x5   : > { %p259_p2 = scmp.lt.s32.totalorder %s908_s25, 5 }
   0x6   : > { %s1186_s26 = smov (%p26_p0, %s25_s26), 0  ;;  %s1188_s27 = smov (!%p26_p0, %s28_s27), %s904_s24 }
   0x7   : > { %p260_p3 = pnand %p731_p1, %p259_p2  ;;  %p30_p4 = scmp.ge.s32.totalorder %s1188_s27, 2 }
   0x8   : > { %p310_p5 = scmp.lt.s32.totalorder (!%p260_p3), %s896_s22, 1  ;;  %s733_s7 = sshll.u32 (!%p260_p3), %s892_s21, 4 }
   0x9   : > { %s1190_s27 = smov (%p30_p4, %s1188_s27), 0  ;;  %263 = sbr.rel (%p260_p3) target bundleno = 366 (0x16e), region = 44 }
   0xa   : > { %p317_p6 = scmp.lt.s32.totalorder (!%p260_p3), %s733_s7, 31 }
   0xe   : > { %v377_v0 = vld [vmem:[%s1175_s1 + $0x78] sm:$0xff]  ;;  %v376_v1 = vld [vmem:[%s1175_s1 + $0x70] sm:$0xff]  ;;  %v375_v2 = vld [vmem:[%s1175_s1 + $0x68] sm:$0xff]  ;;  %s1192_s22 = smov (!%p310_p5, %s896_s22), 1  ;;  %vm353_vm0 = vcmask 1041408   ;;  %vm408_vm1 = vcmask 261120  }
   0xf   : > { %379 = vmatpush.msra.mxu0 %v377_v0  ;;  %v374_v3 = vld [vmem:[%s1175_s1 + $0x60] sm:$0xff]  ;;  %s732_s12 = sshll.u32 %s1192_s22, 1  ;;  %v406_v4 = vld [vmem:[%s1177_s3 + $0x30] sm:$0xff]  ;;  %v407_v5 = vld [vmem:[%s1177_s3 + $0x38] sm:$0xff]  ;;  %s1194_s7 = smov (!%p317_p6, %s733_s7), 31 }
  0x10   : > { %s313_s15 = scalar_lea.vmem %s1174_s0, %s732_s12  ;;  %v373_v6 = vld [vmem:[%s1175_s1 + $0x58] sm:$0xff]  ;;  %424 = vmatpush.msra.mxu1 %v406_v4  ;;  %444 = vmatpush.msra.mxu2 %v407_v5  ;;  %v372_v9 = vld [vmem:[%s1175_s1 + $0x50] sm:$0xff]  ;;  %v371_v10 = vld [vmem:[%s1175_s1 + $0x48] sm:$0xff]  ;;  %s734_s8 = sshll.u32 %s1192_s22, 5 }
  0x11   : > { %380 = vmatpush.msra.mxu0 %v376_v1  ;;  %v344_v7 = vld [vmem:[%s313_s15] sm:$0x1]  ;;  %v345_v8 = vld [vmem:[%s313_s15 + $0x1] sm:$0x1]  ;;  %v369_v12 = vld [vmem:[%s1175_s1 + $0x38] sm:$0xff]  ;;  %s1060_s9 = sadd.s32 %s734_s8, %s1194_s7 }
  0x12   : > { %348 = vst [vmem:[#allocation1] ss:$9 sm:$0xff] %v344_v7  ;;  %v370_v11 = vld [vmem:[%s1175_s1 + $0x40] sm:$0xff]  ;;  %v368_v14 = vld [vmem:[%s1175_s1 + $0x30] sm:$0xff]  ;;  %v367_v17 = vld [vmem:[%s1175_s1 + $0x28] sm:$0xff]  ;;  %s735_s10 = sshll.u32 %s1060_s9, 2 }
  0x13   : > { %381 = vmatpush.msra.mxu0 %v375_v2  ;;  %350 = vst [vmem:[#allocation1 + $0x1] ss:$9 sm:$0xff] %v345_v8  ;;  %v366_v19 = vld [vmem:[%s1175_s1 + $0x20] sm:$0xff]  ;;  %v365_v21 = vld [vmem:[%s1175_s1 + $0x18] sm:$0xff]  ;;  %v364_v23 = vld [vmem:[%s1175_s1 + $0x10] sm:$0xff]  ;;  %s322_s12 = scalar_lea.vmem %s1178_s4, %s735_s10  ;;  %s1069_s14 = scalar_lea.vmem %s1179_s5, %s735_s10 }
  0x14   : > { %v363_v25 = vld [vmem:[%s1175_s1 + $0x8] sm:$0xff]  ;;  %v362_v27 = vld [vmem:[%s1175_s1] sm:$0xff]  ;;  %v402_v31 = vld [vmem:[%s1177_s3 + $0x10] sm:$0xff]  ;;  %s741_s15 = sshll.u32 %s1060_s9, 3 }
  0x15   : > { %382 = vmatpush.msra.mxu0 %v374_v3  ;;  %v404_v29 = vld [vmem:[%s1177_s3 + $0x20] sm:$0xff]  ;;  %v405_v30 = vld [vmem:[%s1177_s3 + $0x28] sm:$0xff]  ;;  %v403_v32 = vld [vmem:[%s1177_s3 + $0x18] sm:$0xff]  ;;  %s1115_s18 = scalar_lea.vmem %s1180_s6, %s741_s15 }
  0x16   : > { %425 = vmatpush.msra.mxu1 %v404_v29  ;;  %445 = vmatpush.msra.mxu2 %v405_v30  ;;  %v400_v33 = vld [vmem:[%s1177_s3] sm:$0xff]  ;;  %v401_v34 = vld [vmem:[%s1177_s3 + $0x8] sm:$0xff]  ;;  %v811_v60 = vld [vmem:[%s322_s12 + $0x10] sm:$0xff]  }
  0x17   : > { %383 = vmatpush.msra.mxu0 %v373_v6  ;;  %v378_v35 = vld [vmem:[%s1176_s2] sm:$0x1]  ;;  %v810_v59 = vld [vmem:[%s322_s12 + $0x8] sm:$0xff]   ;;  %v1071_v62 = vld [vmem:[%s322_s12 + $0x18] sm:$0xff]   ;;  %v756_v8 = vunpack.c.l.bf16 %v811_v60 }
  0x18   : > { %426 = vmatpush.msra.mxu1 %v402_v31  ;;  %446 = vmatpush.msra.mxu2 %v403_v32  ;;  %v747_v57 = vld [vmem:[%s322_s12] sm:$0xff]   ;;  %v817_v5 = vld [vmem:[%s1069_s14 + $0x8] sm:$0xff]   ;;  %v752_v6 = vunpack.c.l.bf16 %v810_v59  ;;  %v753_v7 = vunpack.c.h.bf16 %v810_v59  ;;  %v823_v59 = vld [vmem:[%s1069_s14 + $0x38] sm:$0xff]  }
  0x19   : > { %384 = vmatpush.msra.mxu0 %v372_v9  ;;  %v1073_v63 = vld [vmem:[%s322_s12 + $0x20] sm:$0xff]   ;;  %v748_v2 = vunpack.c.l.bf16 %v747_v57  ;;  %v749_v3 = vunpack.c.h.bf16 %v747_v57  ;;  %v757_v9 = vunpack.c.h.bf16 %v811_v60 }
  0x1a   : > { %v351_v13 = vld [vmem:[#allocation1] sm:$0xff]  ;;  %427 = vmatpush.msra.mxu1 %v400_v33  ;;  %447 = vmatpush.msra.mxu2 %v401_v34 }
  0x1b   : > { %385 = vmatpush.msra.mxu0 %v371_v10  ;;  %v354_v15 = vsel %vm353_vm0, %v351_v13, 0.0  ;;  %v779_v4 = vld [vmem:[%s1069_s14] sm:$0xff]   ;;  %v1077_v10 = vld [vmem:[%s322_s12 + $0x28] sm:$0xff]   ;;  %v764_v13 = vunpack.c.l.bf16 %v1073_v63 }
  0x1c   : > { %v355_v16 = vrot.slane %v354_v15, 4  ;;  %v820_v33 = vld [vmem:[%s1069_s14 + $0x20] sm:$0xff]  }
  0x1d   : > { %386 = vmatpush.msra.mxu0 %v370_v11  ;;  %v760_v11 = vunpack.c.l.bf16 %v1071_v62 }
  0x1e   : > { %v356_v18 = vadd.f32 %v355_v16, %v354_v15  ;;  %v1084_v15 = vld [vmem:[%s322_s12 + $0x38] sm:$0xff]   ;;  %v818_v16 = vld [vmem:[%s1069_s14 + $0x10] sm:$0xff]  }
  0x1f   : > { %387 = vmatpush.msra.mxu0 %v369_v12  ;;  %v761_v12 = vunpack.c.h.bf16 %v1071_v62  ;;  %v776_v29 = vunpack.c.l.bf16 %v1084_v15  ;;  %v788_v30 = vunpack.c.l.bf16 %v818_v16  ;;  %v789_v31 = vunpack.c.h.bf16 %v818_v16 }
  0x20   : > { %v357_v20 = vrot.slane %v356_v18, 2 }
  0x21   : > { %388 = vmatpush.msra.mxu0 %v368_v14  ;;  %v1082_v14 = vld [vmem:[%s322_s12 + $0x30] sm:$0xff]  }
  0x22   : > { %v358_v22 = vadd.f32 %v357_v20, %v356_v18  ;;  %v780_v18 = vunpack.c.l.bf16 %v779_v4  ;;  %v784_v20 = vunpack.c.l.bf16 %v817_v5 }
  0x23   : > { %389 = vmatpush.msra.mxu0 %v367_v17 }
  0x24   : > { %v359_v24 = vrot.slane %v358_v22, 1 }
  0x25   : > { %390 = vmatpush.msra.mxu0 %v366_v19  ;;  %v781_v19 = vunpack.c.h.bf16 %v779_v4 }
  0x26   : > { %v360_v26 = vadd.f32 %v359_v24, %v358_v22  ;;  %v768_v24 = vunpack.c.l.bf16 %v1077_v10 }
  0x27   : > { %391 = vmatpush.msra.mxu0 %v365_v21  ;;  %v819_v21 = vld [vmem:[%s1069_s14 + $0x18] sm:$0xff]  }
  0x28   : > { %v361_v28 = vmul.f32 0.00390625, %v360_v26  ;;  %v785_v26 = vunpack.c.h.bf16 %v817_v5  ;;  %v792_v32 = vunpack.c.l.bf16 %v819_v21 }
  0x29   : > { %392 = vmatpush.msra.mxu0 %v364_v23  ;;  %v765_v23 = vunpack.c.h.bf16 %v1073_v63 }
  0x2b   : > { %393 = vmatpush.msra.mxu0 %v363_v25  ;;  %v769_v25 = vunpack.c.h.bf16 %v1077_v10 }
  0x2d   : > { %394 = vmatpush.msra.mxu0 %v362_v27  ;;  %v772_v27 = vunpack.c.l.bf16 %v1082_v14 }
  0x2e   : > { %395 = vmatmul.f32.vlgmr.msra.gmra.mxu0 %v361_v28  ;;  %v773_v28 = vunpack.c.h.bf16 %v1082_v14 }
  0xab   : > { %v396_v36 = vpop.f32.mrf.mxu0 }
  0xac   : > { %v397_v37 = vadd.f32 %v396_v36, %v378_v35  ;;  %v821_v36 = vld [vmem:[%s1069_s14 + $0x28] sm:$0xff]  }
  0xae   : > { %v399_v38 = vmax.f32 %v397_v37, 0.0 }
  0xb0   : > { %742 = vmatmul.msk.f32.vlgmr.msra.gmra.mxu1 %vm408_vm1, %v399_v38  ;;  %743 = vmatmul.msk.f32.vlgmr.msra.gmra.mxu2 %vm408_vm1, %v399_v38 }
 0x12d   : > { %v429_v39 = vpop.f32.mrf.mxu1 }
 0x133   : > { %v449_v40 = vpop.f32.mrf.mxu2 }
 0x134   : > { %v452_v41 = vmax.f32 %v429_v39, %v449_v40 }
 0x136   : > { %v453_v42 = vsub.f32 %v429_v39, %v452_v41  ;;  %v456_v43 = vsub.f32 %v449_v40, %v452_v41  ;;  %v777_v41 = vunpack.c.h.bf16 %v1084_v15 }
 0x138   : > { %v454_v44 = vmul.f32 1.442695, %v453_v42  ;;  %v457_v45 = vmul.f32 1.442695, %v456_v43  ;;  %v793_v42 = vunpack.c.h.bf16 %v819_v21 }
 0x13a   : > { %864 = vpow2.f32 %v454_v44 }
 0x13b   : > { %866 = vpow2.f32 %v457_v45  ;;  %v796_v45 = vunpack.c.l.bf16 %v820_v33 }
 0x140   : > { %v865_v46 = vpop.eup %864 }
 0x141   : > { %v867_v47 = vpop.eup %866 }
 0x142   : > { %v459_v48 = vadd.f32 %v867_v47, %v865_v46 }
 0x144   : > { %868 = vrcp.f32 %v459_v48  ;;  %v471_v52 = vand.u32 2147483648, %v459_v48  ;;  %v469_v54 = vand.u32 2147483647, %v459_v48  ;;  %vm465_vm3 = vweird.f32 %v459_v48 }
 0x146   : > { %v472_v56 = vor.u32 1.1754944e-38, %v471_v52  ;;  %vm470_vm5 = vcmp.eq.f32.partialorder %v469_v54, 8.507059e+37 }
 0x14a   : > { %v869_v49 = vpop.eup %868 }
 0x14b   : > { %v461_v50 = vmul.f32 %v869_v49, %v459_v48  ;;  %vm466_vm2 = vweird.f32 %v869_v49 }
 0x14c   : > { %vm467_vm4 = vmor %vm465_vm3, %vm466_vm2 }
 0x14d   : > { %v462_v51 = vsub.f32 1.0, %v461_v50  ;;  %v822_v50 = vld [vmem:[%s1069_s14 + $0x30] sm:$0xff]  }
 0x14e   : > { %v804_v63 = vunpack.c.l.bf16 %v822_v50 }
 0x14f   : > { %v463_v53 = vmul.f32 %v869_v49, %v462_v51 }
 0x151   : > { %v464_v55 = vadd.f32 %v869_v49, %v463_v53 }
 0x153   : > { %v468_v58 = vsel %vm467_vm4, %v869_v49, %v464_v55  ;;  %v800_v49 = vunpack.c.l.bf16 %v821_v36 }
 0x154   : > { %v473_v61 = vsel %vm470_vm5, %v472_v56, %v468_v58  ;;  %v801_v58 = vunpack.c.h.bf16 %v821_v36 }
 0x155   : > { %v475_v0 = vmul.f32 %v865_v46, %v473_v61  ;;  %v476_v1 = vmul.f32 %v867_v47, %v473_v61  ;;  %v797_v46 = vunpack.c.h.bf16 %v820_v33 }
 0x157   : > { %v1087_v17 = vperm.slane %v475_v0, 0  ;;  %v1090_v22 = vperm.slane %v476_v1, 0 }
 0x159   : > { %v510_v34 = vmul.f32 %v748_v2, %v1087_v17  ;;  %v511_v35 = vmul.f32 %v749_v3, %v1087_v17  ;;  %v512_v37 = vmul.f32 %v752_v6, %v1087_v17  ;;  %v559_v38 = vmul.f32 %v780_v18, %v1090_v22 }
 0x15a   : > { %v560_v39 = vmul.f32 %v781_v19, %v1090_v22  ;;  %v561_v40 = vmul.f32 %v784_v20, %v1090_v22  ;;  %v513_v43 = vmul.f32 %v753_v7, %v1087_v17  ;;  %v562_v44 = vmul.f32 %v785_v26, %v1090_v22 }
 0x15b   : > { %v514_v47 = vmul.f32 %v756_v8, %v1087_v17  ;;  %v563_v48 = vmul.f32 %v788_v30, %v1090_v22  ;;  %v515_v51 = vmul.f32 %v757_v9, %v1087_v17  ;;  %v516_v52 = vmul.f32 %v760_v11, %v1087_v17 }
 0x15c   : > { %v564_v53 = vmul.f32 %v789_v31, %v1090_v22  ;;  %v565_v54 = vmul.f32 %v792_v32, %v1090_v22  ;;  %v575_v55 = vadd.f32 %v559_v38, %v510_v34  ;;  %v576_v56 = vadd.f32 %v560_v39, %v511_v35 }
 0x15d   : > { %v577_v57 = vadd.f32 %v561_v40, %v512_v37  ;;  %v517_v60 = vmul.f32 %v761_v12, %v1087_v17  ;;  %v566_v61 = vmul.f32 %v793_v42, %v1090_v22  ;;  %v578_v62 = vadd.f32 %v562_v44, %v513_v43 }
 0x15e   : > { %v518_v0 = vmul.f32 %v764_v13, %v1087_v17  ;;  %v567_v1 = vmul.f32 %v796_v45, %v1090_v22  ;;  %v579_v2 = vadd.f32 %v563_v48, %v514_v47  ;;  %591 = vst [vmem:[%s1115_s18] sm:$0xff] %v575_v55  ;;  %v805_v3 = vunpack.c.h.bf16 %v822_v50 }
 0x15f   : > { %v519_v4 = vmul.f32 %v765_v23, %v1087_v17  ;;  %v568_v5 = vmul.f32 %v797_v46, %v1090_v22  ;;  %v580_v6 = vadd.f32 %v564_v53, %v515_v51  ;;  %592 = vst [vmem:[%s1115_s18 + $0x8] sm:$0xff] %v576_v56  ;;  %v808_v7 = vunpack.c.l.bf16 %v823_v59 }
 0x160   : > { %v520_v8 = vmul.f32 %v768_v24, %v1087_v17  ;;  %v569_v9 = vmul.f32 %v800_v49, %v1090_v22  ;;  %v581_v10 = vadd.f32 %v565_v54, %v516_v52  ;;  %593 = vst [vmem:[%s1115_s18 + $0x10] sm:$0xff] %v577_v57  ;;  %v809_v11 = vunpack.c.h.bf16 %v823_v59 }
 0x161   : > { %v521_v12 = vmul.f32 %v769_v25, %v1087_v17  ;;  %v570_v13 = vmul.f32 %v801_v58, %v1090_v22  ;;  %v582_v14 = vadd.f32 %v566_v61, %v517_v60  ;;  %594 = vst [vmem:[%s1115_s18 + $0x18] sm:$0xff] %v578_v62  ;;  %v522_v16 = vmul.f32 %v772_v27, %v1087_v17 }
 0x162   : > { %v571_v18 = vmul.f32 %v804_v63, %v1090_v22  ;;  %v583_v19 = vadd.f32 %v567_v1, %v518_v0  ;;  %595 = vst [vmem:[%s1115_s18 + $0x20] sm:$0xff] %v579_v2  ;;  %v523_v20 = vmul.f32 %v773_v28, %v1087_v17  ;;  %v572_v21 = vmul.f32 %v805_v3, %v1090_v22 }
 0x163   : > { %v584_v23 = vadd.f32 %v568_v5, %v519_v4  ;;  %596 = vst [vmem:[%s1115_s18 + $0x28] sm:$0xff] %v580_v6  ;;  %v524_v24 = vmul.f32 %v776_v29, %v1087_v17  ;;  %v573_v25 = vmul.f32 %v808_v7, %v1090_v22  ;;  %v585_v26 = vadd.f32 %v569_v9, %v520_v8 }
 0x164   : > { %597 = vst [vmem:[%s1115_s18 + $0x30] sm:$0xff] %v581_v10  ;;  %v525_v27 = vmul.f32 %v777_v41, %v1087_v17  ;;  %v574_v28 = vmul.f32 %v809_v11, %v1090_v22  ;;  %v586_v30 = vadd.f32 %v570_v13, %v521_v12  ;;  %v587_v31 = vadd.f32 %v571_v18, %v522_v16 }
 0x165   : > { %598 = vst [vmem:[%s1115_s18 + $0x38] sm:$0xff] %v582_v14  ;;  %v588_v32 = vadd.f32 %v572_v21, %v523_v20  ;;  %v589_v15 = vadd.f32 %v573_v25, %v524_v24 }
 0x166   : > { %599 = vst [vmem:[%s1115_s18 + $0x40] sm:$0xff] %v583_v19  ;;  %v590_v29 = vadd.f32 %v574_v28, %v525_v27 }
 0x167   : > { %600 = vst [vmem:[%s1115_s18 + $0x48] sm:$0xff] %v584_v23 }
 0x168   : > { %601 = vst [vmem:[%s1115_s18 + $0x50] sm:$0xff] %v585_v26 }
 0x169   : > { %602 = vst [vmem:[%s1115_s18 + $0x58] sm:$0xff] %v586_v30 }
 0x16a   : > { %603 = vst [vmem:[%s1115_s18 + $0x60] sm:$0xff] %v587_v31 }
 0x16b   : > { %604 = vst [vmem:[%s1115_s18 + $0x68] sm:$0xff] %v588_v32 }
 0x16c   : > { %605 = vst [vmem:[%s1115_s18 + $0x70] sm:$0xff] %v589_v15 }
 0x16d   : > { %606 = vst [vmem:[%s1115_s18 + $0x78] sm:$0xff] %v590_v29 }
 0x16e PF: > { %s16_s25 = sadd.s32 1, %s908_s25   ;;  %s1181_s21 = smov %s900_s23 }
 0x16f   : > { %p13_p7 = scmp.ge.s32.totalorder %s16_s25, 6   ;;  %s1182_s22 = smov %s904_s24 }
 0x170   : > { %s1183_s23 = smov %s1186_s26  ;;  %s1184_s24 = smov %s1190_s27 }
 0x171   :  { %15 = sbr.rel (!%p13_p7) target bundleno = 3 (0x3), region = 81 }

</bundles_post_ra>
